<compile_context>
chip_gen: v5e
topology: v5e:2x2
jax: 0.10.0
libtpu: 0.0.40
codegen_flags: <defaults>
</compile_context>

<pallas_src>
import math

import jax
import jax.numpy as jnp
from jax.experimental import pallas as pl
from jax.experimental.pallas import tpu as pltpu


def _round_up(x, m):
    return ((x + m - 1) // m) * m


def _choose_block_b(batch):
    """8-aligned batch tile, capped at 256 rows; prefers >=2 grid steps."""
    b8 = _round_up(batch, 8)
    cap = 256
    if b8 <= 8:
        return 8
    if b8 > 2 * cap:
        return cap
    # split into (at least) two tiles so v7x's second TensorCore gets work
    return min(cap, _round_up((b8 + 1) // 2, 8))


def _vmem_bytes_estimate(block_b, latent_dim, h1, h2, out_p):
    bf16, f32 = 2, 4
    z_blk = block_b * latent_dim * bf16
    out_blk = block_b * out_p * f32
    weights = (latent_dim * h1 + h1 * h2 + h2 * out_p) * bf16
    biases = (h1 + h2 + out_p) * f32
    acts = block_b * (h1 + h2) * f32            # in-kernel intermediates
    # inputs/outputs (and, conservatively, weights) may be double-buffered
    return 2 * (z_blk + out_blk + weights + biases) + acts


def _decoder_kernel(z_ref, w1_ref, b1_ref, w2_ref, b2_ref, w3_ref, b3_ref,
                    out_ref):
    """Fused MLP: (linear + LeakyReLU) x2, then output linear.

    Matmul inputs are bf16 (weights streamed as bf16, activations cast right
    before each dot); accumulation / bias / activation are f32.
    """
    neg_slope = jnp.float32(0.2)

    # hidden layer 1 (z_ref already bf16)
    h = jnp.dot(z_ref[...], w1_ref[...], preferred_element_type=jnp.float32)
    h = h + b1_ref[...]                       # (1, H1) broadcasts over batch
    h = jnp.where(h > 0, h, neg_slope * h)    # LeakyReLU(0.2), f32

    # hidden layer 2
    h = jnp.dot(h.astype(jnp.bfloat16), w2_ref[...],
                preferred_element_type=jnp.float32)
    h = h + b2_ref[...]
    h = jnp.where(h > 0, h, neg_slope * h)

    # output linear (dropout == identity in eval mode)
    o = jnp.dot(h.astype(jnp.bfloat16), w3_ref[...],
                preferred_element_type=jnp.float32)
    o = o + b3_ref[...]

    out_ref[...] = o.astype(out_ref.dtype)


def cell_state_decoder(z, params, *, block_b=None):
    """z: [B, latent_dim] float32. params: dict of f32 weights/biases."""
    # Stream weights to the MXU as bf16; keep biases f32.
    w1 = params["w1"].astype(jnp.bfloat16)
    w2 = params["w2"].astype(jnp.bfloat16)
    w3 = params["w3"].astype(jnp.bfloat16)
    b1 = params["b1"].astype(jnp.float32)
    b2 = params["b2"].astype(jnp.float32)
    b3 = params["b3"].astype(jnp.float32)

    B, latent_dim = z.shape
    h1 = w1.shape[1]
    h2 = w2.shape[1]
    out_dim = w3.shape[1]

    if block_b is None:
        block_b = _choose_block_b(B)
    assert block_b % 8 == 0, "block_b must be a multiple of 8 (sublane tiling)"

    # Pad batch so the grid divides exactly (padded rows sliced off below).
    B_p = _round_up(B, block_b)
    if B_p != B:
        z = jnp.pad(z, ((0, B_p - B), (0, 0)))
    z_bf16 = z.astype(jnp.bfloat16)

    # Keep the output lane-dense: pad out features to a multiple of 128 by
    # zero-padding W3/b3 columns, then slice the result in the wrapper.
    out_p = _round_up(out_dim, 128)
    if out_p != out_dim:
        w3 = jnp.pad(w3, ((0, 0), (0, out_p - out_dim)))
        b3 = jnp.pad(b3, ((0, 0), (0, out_p - out_dim)))

    grid = (B_p // block_b,)

    flops = 2 * B_p * (latent_dim * h1 + h1 * h2 + h2 * out_p)
    bytes_accessed = (
        B_p * latent_dim * 2                                   # z (bf16)
        + B_p * out_p * 4                                      # out (f32)
        + (latent_dim * h1 + h1 * h2 + h2 * out_p) * 2         # weights (bf16)
        + (h1 + h2 + out_p) * 4)                               # biases (f32)
    cost = pl.CostEstimate(flops=flops, transcendentals=0,
                           bytes_accessed=bytes_accessed)

    vmem_est = _vmem_bytes_estimate(block_b, latent_dim, h1, h2, out_p)
    vmem_limit = min(48 << 20, max(32 << 20, int(1.5 * vmem_est) + (1 << 20)))

    out = pl.pallas_call(
        _decoder_kernel,
        out_shape=jax.ShapeDtypeStruct((B_p, out_p), jnp.float32),
        grid_spec=pltpu.PrefetchScalarGridSpec(
            num_scalar_prefetch=0,
            grid=grid,
            in_specs=[
                pl.BlockSpec((block_b, latent_dim), lambda i: (i, 0)),
                pl.BlockSpec((latent_dim, h1), lambda i: (0, 0)),
                pl.BlockSpec((1, h1), lambda i: (0, 0)),
                pl.BlockSpec((h1, h2), lambda i: (0, 0)),
                pl.BlockSpec((1, h2), lambda i: (0, 0)),
                pl.BlockSpec((h2, out_p), lambda i: (0, 0)),
                pl.BlockSpec((1, out_p), lambda i: (0, 0)),
            ],
            out_specs=pl.BlockSpec((block_b, out_p), lambda i: (i, 0)),
        ),
        compiler_params=pltpu.CompilerParams(
            dimension_semantics=("parallel",),
            vmem_limit_bytes=vmem_limit),
        cost_estimate=cost,
    )(z_bf16, w1, b1, w2, b2, w3, b3)

    out = out[:B, :out_dim]
    # matches `z.squeeze()` in the PyTorch forward
    return jnp.squeeze(out)


def _xavier_uniform(key, fan_in, fan_out, dtype=jnp.float32):
    # torch.nn.init.xavier_uniform_ : U(-a, a), a = sqrt(6 / (fan_in + fan_out))
    a = math.sqrt(6.0 / (fan_in + fan_out))
    return jax.random.uniform(key, (fan_in, fan_out), dtype=dtype,
                              minval=-a, maxval=a)


def init_params(key, latent_dim, out_dim, hidden_layers=(256, 512)):
    k1, k2, k3 = jax.random.split(key, 3)
    h1, h2 = hidden_layers
    return {
        "w1": _xavier_uniform(k1, latent_dim, h1),
        "b1": jnp.zeros((1, h1), jnp.float32),
        "w2": _xavier_uniform(k2, h1, h2),
        "b2": jnp.zeros((1, h2), jnp.float32),
        "w3": _xavier_uniform(k3, h2, out_dim),
        "b3": jnp.zeros((1, out_dim), jnp.float32),
    }


def _reference(z, params):
    # Same bf16-input / f32-accumulate math as the kernel.
    neg = 0.2
    w1 = params["w1"].astype(jnp.bfloat16)
    w2 = params["w2"].astype(jnp.bfloat16)
    w3 = params["w3"].astype(jnp.bfloat16)
    h = jnp.dot(z.astype(jnp.bfloat16), w1,
                preferred_element_type=jnp.float32) + params["b1"]
    h = jnp.where(h > 0, h, neg * h)
    h = jnp.dot(h.astype(jnp.bfloat16), w2,
                preferred_element_type=jnp.float32) + params["b2"]
    h = jnp.where(h > 0, h, neg * h)
    o = jnp.dot(h.astype(jnp.bfloat16), w3,
                preferred_element_type=jnp.float32) + params["b3"]
    return jnp.squeeze(o)


if __name__ == "__main__":
    key = jax.random.PRNGKey(0)
    k_z, k_p = jax.random.split(key)

    B, latent_dim, out_dim = 8, 32, 128
    hidden_layers = (256, 512)

    z = jax.random.normal(k_z, (B, latent_dim), dtype=jnp.float32)
    params = init_params(k_p, latent_dim, out_dim, hidden_layers)

    out = jax.block_until_ready(cell_state_decoder(z, params))
    ref = _reference(z, params)

    assert out.shape == (B, out_dim), out.shape
    assert jnp.allclose(out, ref, atol=2e-2, rtol=2e-2), \
        float(jnp.max(jnp.abs(out - ref)))

    print("KERNEL_OK")
</pallas_src>

<mosaic_0001>
module attributes {stable_mosaic.version = 11 : i64} {
  func.func @_decoder_kernel(%arg0: i32, %arg1: memref<8x32xbf16, #tpu.memory_space<vmem>>, %arg2: memref<32x256xbf16, #tpu.memory_space<vmem>>, %arg3: memref<1x256xf32, #tpu.memory_space<vmem>>, %arg4: memref<256x512xbf16, #tpu.memory_space<vmem>>, %arg5: memref<1x512xf32, #tpu.memory_space<vmem>>, %arg6: memref<512x128xbf16, #tpu.memory_space<vmem>>, %arg7: memref<1x128xf32, #tpu.memory_space<vmem>>, %arg8: memref<8x128xf32, #tpu.memory_space<vmem>>) attributes {dimension_semantics = [#tpu.dimension_semantics<parallel>], iteration_bounds = array<i64: 1>, scalar_prefetch = 0 : i64, scratch_operands = 0 : i64, tpu.core_type = #tpu.core_type<tc>, window_params = [{transform_indices = @transform_0, window_bounds = array<i64: 8, 32>}, {pipeline_mode = #tpu.pipeline_mode<synchronous>, transform_indices = @transform_1, window_bounds = array<i64: 32, 256>}, {pipeline_mode = #tpu.pipeline_mode<synchronous>, transform_indices = @transform_2, window_bounds = array<i64: 1, 256>}, {pipeline_mode = #tpu.pipeline_mode<synchronous>, transform_indices = @transform_3, window_bounds = array<i64: 256, 512>}, {pipeline_mode = #tpu.pipeline_mode<synchronous>, transform_indices = @transform_4, window_bounds = array<i64: 1, 512>}, {pipeline_mode = #tpu.pipeline_mode<synchronous>, transform_indices = @transform_5, window_bounds = array<i64: 512, 128>}, {pipeline_mode = #tpu.pipeline_mode<synchronous>, transform_indices = @transform_6, window_bounds = array<i64: 1, 128>}, {transform_indices = @transform_7, window_bounds = array<i64: 8, 128>}]} {
    %c0 = arith.constant 0 : index
    %c0_0 = arith.constant 0 : index
    %0 = vector.load %arg1[%c0, %c0_0] : memref<8x32xbf16, #tpu.memory_space<vmem>>, vector<8x32xbf16>
    %c0_1 = arith.constant 0 : index
    %c0_2 = arith.constant 0 : index
    %1 = vector.load %arg2[%c0_1, %c0_2] : memref<32x256xbf16, #tpu.memory_space<vmem>>, vector<32x256xbf16>
    %cst = arith.constant dense<0.000000e+00> : vector<8x256xf32>
    %2 = tpu.matmul %0, %1, %cst {dimension_numbers = #tpu.dot_dimension_numbers<[1], [0], [0], [1], [0, 0, 1, 1], [], []>} : vector<8x32xbf16>, vector<32x256xbf16>, vector<8x256xf32> -> vector<8x256xf32>
    %c0_3 = arith.constant 0 : index
    %c0_4 = arith.constant 0 : index
    %3 = vector.load %arg3[%c0_3, %c0_4] : memref<1x256xf32, #tpu.memory_space<vmem>>, vector<1x256xf32>
    %4 = vector.broadcast %3 : vector<1x256xf32> to vector<8x256xf32>
    %5 = arith.addf %2, %4 : vector<8x256xf32>
    %cst_5 = arith.constant 0.000000e+00 : f32
    %6 = vector.broadcast %cst_5 : f32 to vector<8x256xf32>
    %7 = arith.cmpf ogt, %5, %6 : vector<8x256xf32>
    %cst_6 = arith.constant 2.000000e-01 : f32
    %8 = vector.broadcast %cst_6 : f32 to vector<8x256xf32>
    %9 = arith.mulf %8, %5 : vector<8x256xf32>
    %10 = arith.select %7, %5, %9 : vector<8x256xi1>, vector<8x256xf32>
    %11 = arith.truncf %10 : vector<8x256xf32> to vector<8x256xbf16>
    %c0_7 = arith.constant 0 : index
    %c0_8 = arith.constant 0 : index
    %12 = vector.load %arg4[%c0_7, %c0_8] : memref<256x512xbf16, #tpu.memory_space<vmem>>, vector<256x512xbf16>
    %cst_9 = arith.constant dense<0.000000e+00> : vector<8x512xf32>
    %13 = tpu.matmul %11, %12, %cst_9 {dimension_numbers = #tpu.dot_dimension_numbers<[1], [0], [0], [1], [0, 0, 1, 1], [], []>} : vector<8x256xbf16>, vector<256x512xbf16>, vector<8x512xf32> -> vector<8x512xf32>
    %c0_10 = arith.constant 0 : index
    %c0_11 = arith.constant 0 : index
    %14 = vector.load %arg5[%c0_10, %c0_11] : memref<1x512xf32, #tpu.memory_space<vmem>>, vector<1x512xf32>
    %15 = vector.broadcast %14 : vector<1x512xf32> to vector<8x512xf32>
    %16 = arith.addf %13, %15 : vector<8x512xf32>
    %cst_12 = arith.constant 0.000000e+00 : f32
    %17 = vector.broadcast %cst_12 : f32 to vector<8x512xf32>
    %18 = arith.cmpf ogt, %16, %17 : vector<8x512xf32>
    %cst_13 = arith.constant 2.000000e-01 : f32
    %19 = vector.broadcast %cst_13 : f32 to vector<8x512xf32>
    %20 = arith.mulf %19, %16 : vector<8x512xf32>
    %21 = arith.select %18, %16, %20 : vector<8x512xi1>, vector<8x512xf32>
    %22 = arith.truncf %21 : vector<8x512xf32> to vector<8x512xbf16>
    %c0_14 = arith.constant 0 : index
    %c0_15 = arith.constant 0 : index
    %23 = vector.load %arg6[%c0_14, %c0_15] : memref<512x128xbf16, #tpu.memory_space<vmem>>, vector<512x128xbf16>
    %cst_16 = arith.constant dense<0.000000e+00> : vector<8x128xf32>
    %24 = tpu.matmul %22, %23, %cst_16 {dimension_numbers = #tpu.dot_dimension_numbers<[1], [0], [0], [1], [0, 0, 1, 1], [], []>} : vector<8x512xbf16>, vector<512x128xbf16>, vector<8x128xf32> -> vector<8x128xf32>
    %c0_17 = arith.constant 0 : index
    %c0_18 = arith.constant 0 : index
    %25 = vector.load %arg7[%c0_17, %c0_18] : memref<1x128xf32, #tpu.memory_space<vmem>>, vector<1x128xf32>
    %26 = vector.broadcast %25 : vector<1x128xf32> to vector<8x128xf32>
    %27 = arith.addf %24, %26 : vector<8x128xf32>
    %c0_19 = arith.constant 0 : index
    %c0_20 = arith.constant 0 : index
    %28 = vector.load %arg8[%c0_19, %c0_20] : memref<8x128xf32, #tpu.memory_space<vmem>>, vector<8x128xf32>
    tpu.vector_store %arg8[%c0_19, %c0_20], %27 {strides = array<i32>} : memref<8x128xf32, #tpu.memory_space<vmem>>, vector<8x128xf32>,
    return
  }
  func.func @transform_0(%arg0: i32) -> (i32, i32) {
    %c0_i32 = arith.constant 0 : i32
    %c0_i32_0 = arith.constant 0 : i32
    return %arg0, %c0_i32 : i32, i32
  }
  func.func @transform_1(%arg0: i32) -> (i32, i32) {
    %c0_i32 = arith.constant 0 : i32
    %c0_i32_0 = arith.constant 0 : i32
    %c0_i32_1 = arith.constant 0 : i32
    return %c0_i32, %c0_i32_0 : i32, i32
  }
  func.func @transform_2(%arg0: i32) -> (i32, i32) {
    %c0_i32 = arith.constant 0 : i32
    %c0_i32_0 = arith.constant 0 : i32
    %c0_i32_1 = arith.constant 0 : i32
    return %c0_i32, %c0_i32_0 : i32, i32
  }
  func.func @transform_3(%arg0: i32) -> (i32, i32) {
    %c0_i32 = arith.constant 0 : i32
    %c0_i32_0 = arith.constant 0 : i32
    %c0_i32_1 = arith.constant 0 : i32
    return %c0_i32, %c0_i32_0 : i32, i32
  }
  func.func @transform_4(%arg0: i32) -> (i32, i32) {
    %c0_i32 = arith.constant 0 : i32
    %c0_i32_0 = arith.constant 0 : i32
    %c0_i32_1 = arith.constant 0 : i32
    return %c0_i32, %c0_i32_0 : i32, i32
  }
  func.func @transform_5(%arg0: i32) -> (i32, i32) {
    %c0_i32 = arith.constant 0 : i32
    %c0_i32_0 = arith.constant 0 : i32
    %c0_i32_1 = arith.constant 0 : i32
    return %c0_i32, %c0_i32_0 : i32, i32
  }
  func.func @transform_6(%arg0: i32) -> (i32, i32) {
    %c0_i32 = arith.constant 0 : i32
    %c0_i32_0 = arith.constant 0 : i32
    %c0_i32_1 = arith.constant 0 : i32
    return %c0_i32, %c0_i32_0 : i32, i32
  }
  func.func @transform_7(%arg0: i32) -> (i32, i32) {
    %c0_i32 = arith.constant 0 : i32
    %c0_i32_0 = arith.constant 0 : i32
    return %arg0, %c0_i32 : i32, i32
  }
}

</mosaic_0001>

<bundles_post_ra>
// kernel: tpu_custom_call.1
= control target key start
LH: loop header
LB: loop body
LE: loop exit
PB: predicated region body
PF: predicated region fallthrough
CT: control target
= control target key end

     0   :  { %12 = vsyncpa [#allocation3], 0  ;;  %s1805_s0 = inlined_call_operand.hbm [shape: bf16[8,32], index: 0, kind: input, shape index: {}]   ;;  %s1806_s1 = inlined_call_operand.hbm [shape: bf16[32,256], index: 1, kind: input, shape index: {}]   ;;  %s1807_s2 = inlined_call_operand.hbm [shape: f32[1,256], index: 2, kind: input, shape index: {}]   ;;  %s1808_s3 = inlined_call_operand.hbm [shape: bf16[256,512], index: 3, kind: input, shape index: {}]   ;;  %s1809_s4 = inlined_call_operand.hbm [shape: f32[1,512], index: 4, kind: input, shape index: {}]   ;;  %s1810_s5 = inlined_call_operand.hbm [shape: bf16[512,128], index: 5, kind: input, shape index: {}]   ;;  %s1811_s6 = inlined_call_operand.vmem [shape: f32[1,128], index: 6, kind: input, shape index: {}]   ;;  %s1812_s7 = inlined_call_operand.hbm [shape: f32[8,128], index: 7, kind: output, shape index: {}]  }
   0x1   :  { %13 = vsyncpa [#allocation6], 0 }
   0x2   :  { %14 = vsyncpa [#allocation9], 0 }
   0x3   :  { %15 = vsyncpa [#allocation12], 0  ;;  %s32_s26 = sshll.u32 %s1806_s1, 4  ;;  %s33_s26 = int_to_ptr.hbm [resolvable:$true] %s32_s26 }
   0x4   :  { %16 = vsyncpa [#allocation4], 0  ;;  %s1726_s27 = smov [#allocation5]   ;;  %s56_s8 = sshll.u32 %s1808_s3, 4  ;;  %s57_s8 = int_to_ptr.hbm [resolvable:$true] %s56_s8 }
   0x5   :  { %s34_s28 = sshll.u32 %s1726_s27, 4  ;;  %s1727_s9 = smov 128   ;;  %s35_s28 = int_to_ptr.vmem [resolvable:$true] %s34_s28 }
   0x6   :  { %s1728_s10 = smov 8   ;;  %s1729_s11 = smov [#allocation8]  }
   0x7   :  { %40 = dma.hbm_to_vmem [thread:$0]  %s33_s26, 512, %s35_s28, [#allocation6], %s1727_s9, %s1727_s9, %s1728_s10  }
   0x8   :  { %s58_s12 = sshll.u32 %s1729_s11, 4  ;;  %s1730_s13 = smov 256   ;;  %s59_s12 = int_to_ptr.vmem [resolvable:$true] %s58_s12 }
   0x9   :  { %s1731_s14 = smov 16   ;;  %s22_s16 = sshll.u32 %s1805_s0, 4  ;;  %s23_s16 = int_to_ptr.hbm [resolvable:$true] %s22_s16 }
   0xa   :  { %64 = dma.hbm_to_vmem [thread:$0]  %s57_s8, 8192, %s59_s12, [#allocation9], %s1730_s13, %s1730_s13, %s1731_s14  }
   0xb   :  { %s1732_s17 = smov [#allocation2]   ;;  %s46_s20 = sshll.u32 %s1807_s2, 4  ;;  %s47_s20 = int_to_ptr.hbm [resolvable:$true] %s46_s20 }
   0xc   :  { %s24_s18 = sshll.u32 %s1732_s17, 4  ;;  %s1733_s21 = smov [#allocation7]   ;;  %s25_s18 = int_to_ptr.vmem [resolvable:$true] %s24_s18 }
   0xd   :  { %27 = dma.hbm_to_vmem [thread:$0]  %s23_s16, 64, %s25_s18, [#allocation3]  }
   0xe   :  { %s48_s22 = sshll.u32 %s1733_s21, 4  ;;  %s70_s25 = sshll.u32 %s1809_s4, 4  ;;  %s49_s22 = int_to_ptr.vmem [resolvable:$true] %s48_s22  ;;  %s71_s25 = int_to_ptr.hbm [resolvable:$true] %s70_s25 }
   0xf   :  { %51 = dma.hbm_to_vmem [thread:$0]  %s47_s20, 32, %s49_s22, [#allocation6]  }
  0x10   :  { %s80_s27 = sshll.u32 %s1810_s5, 4  ;;  %s1734_s28 = smov [#allocation10]   ;;  %s81_s27 = int_to_ptr.hbm [resolvable:$true] %s80_s27 }
  0x11   :  { %s72_s29 = sshll.u32 %s1734_s28, 4  ;;  %s1735_s2 = smov [#allocation11]   ;;  %s73_s29 = int_to_ptr.vmem [resolvable:$true] %s72_s29 }
  0x12   :  { %75 = dma.hbm_to_vmem [thread:$0]  %s71_s25, 64, %s73_s29, [#allocation9]  }
  0x13   :  { %s82_s30 = sshll.u32 %s1735_s2, 4  ;;  %s1736_s8 = smov 64   ;;  %s83_s30 = int_to_ptr.vmem [resolvable:$true] %s82_s30 }
  0x14   :  { %s1737_s9 = smov 4  }
  0x15   :  { %88 = dma.hbm_to_vmem [thread:$0]  %s81_s27, 4096, %s83_s30, [#allocation12], %s1736_s8, %s1736_s8, %s1737_s9  }
  0x16   :  { %1716 = dma.done.wait [#allocation3], 64  }
  0x17   :  { %1717 = vsyncadd [#allocation3], 4294967232 }
  0x18   :  { %1718 = dma.done.wait [#allocation6], 544  }
  0x19   :  { %1719 = vsyncadd [#allocation6], 4294966752 }
  0x1a   :  { %1720 = dma.done.wait [#allocation9], 8256  }
  0x1b   :  { %1721 = vsyncadd [#allocation9], 4294959040 }
  0x1c   :  { %1722 = dma.done.wait [#allocation12], 4096  }
  0x1d   :  { %1723 = vsyncadd [#allocation12], 4294963200  ;;  %v1042_v0 = vld [vmem:[#allocation5 + $0x10] sm:$0xf]  ;;  %v1437_v1 = vld [vmem:[#allocation5 + $0x14] sm:$0xf0] }
  0x1e   :  { %v1436_v2 = vld [vmem:[#allocation5 + $0x14] sm:$0xf]  ;;  %v1043_v3 = vor.u32 %v1437_v1, %v1042_v0  ;;  %v1044_v4 = vld [vmem:[#allocation5 + $0x18] sm:$0xf0]  ;;  %v1034_v5 = vld [vmem:[#allocation5] sm:$0xf] }
  0x1f   :  { %v1435_v6 = vld [vmem:[#allocation5 + $0x4] sm:$0xf0]  ;;  %v1047_v7 = vor.u32 %v1436_v2, %v1044_v4  ;;  %v1434_v8 = vld [vmem:[#allocation5 + $0x4] sm:$0xf]  ;;  %v1036_v9 = vld [vmem:[#allocation5 + $0x8] sm:$0xf0] }
  0x20   :  { %vm147_vm0 = vcmask 261120   ;;  %157 = vmatpush.bf16.msra.mxu0 %v1043_v3  ;;  %v1035_v10 = vor.u32 %v1435_v6, %v1034_v5  ;;  %v1164_v11 = vld [vmem:[#allocation8 + $0xe0] sm:$0xf]  ;;  %v1468_v12 = vld [vmem:[#allocation8 + $0xec] sm:$0xf0]  ;;  %v1039_v14 = vor.u32 %v1434_v8, %v1036_v9  ;;  %s1738_s10 = smov [#allocation13]  }
  0x21   :  { %v1292_v13 = vld [vmem:[#allocation8 + $0x1e0] sm:$0xf]  ;;  %170 = vmatpush.bf16.msra.mxu1 %v1047_v7  ;;  %v1165_v15 = vor.u32 %v1468_v12, %v1164_v11  ;;  %v1500_v16 = vld [vmem:[#allocation8 + $0x1ec] sm:$0xf0]  ;;  %v1466_v17 = vld [vmem:[#allocation8 + $0xe4] sm:$0xf] }
  0x22   :  { %v1166_v18 = vld [vmem:[#allocation8 + $0xf0] sm:$0xf0]  ;;  %v116_v19 = vld [vmem:[#allocation2] sm:$0xf]  ;;  %v1293_v20 = vor.u32 %v1500_v16, %v1292_v13  ;;  %v1498_v22 = vld [vmem:[#allocation8 + $0x1e4] sm:$0xf] }
  0x23   :  { %v1169_v21 = vor.u32 %v1466_v17, %v1166_v18  ;;  %v1294_v23 = vld [vmem:[#allocation8 + $0x1f0] sm:$0xf0]  ;;  %v1148_v24 = vld [vmem:[#allocation8 + $0xc0] sm:$0xf]  ;;  %579 = vmatpush.bf16.msra.mxu2 %v1165_v15  ;;  %v1464_v26 = vld [vmem:[#allocation8 + $0xcc] sm:$0xf0] }
  0x24   :  { %v1297_v25 = vor.u32 %v1498_v22, %v1294_v23  ;;  %v1276_v27 = vld [vmem:[#allocation8 + $0x1c0] sm:$0xf]  ;;  %v1496_v28 = vld [vmem:[#allocation8 + $0x1cc] sm:$0xf0]  ;;  %158 = vmatpush.bf16.msra.mxu0 %v1035_v10  ;;  %592 = vmatpush.bf16.msra.mxu3 %v1293_v20  ;;  %v1149_v29 = vor.u32 %v1464_v26, %v1148_v24  ;;  %v1462_v31 = vld [vmem:[#allocation8 + $0xc4] sm:$0xf] }
  0x25   :  { %v1277_v30 = vor.u32 %v1496_v28, %v1276_v27  ;;  %v1150_v32 = vld [vmem:[#allocation8 + $0xd0] sm:$0xf0]  ;;  %v1494_v33 = vld [vmem:[#allocation8 + $0x1c4] sm:$0xf]  ;;  %171 = vmatpush.bf16.msra.mxu1 %v1039_v14  ;;  %v1132_v36 = vld [vmem:[#allocation8 + $0xa0] sm:$0xf] }
  0x26   :  { %v1153_v34 = vor.u32 %v1462_v31, %v1150_v32  ;;  %v1278_v35 = vld [vmem:[#allocation8 + $0x1d0] sm:$0xf0]  ;;  %v1460_v37 = vld [vmem:[#allocation8 + $0xac] sm:$0xf0]  ;;  %v1260_v39 = vld [vmem:[#allocation8 + $0x1a0] sm:$0xf] }
  0x27   :  { %v1281_v38 = vor.u32 %v1494_v33, %v1278_v35  ;;  %v1492_v40 = vld [vmem:[#allocation8 + $0x1ac] sm:$0xf0]  ;;  %v1458_v41 = vld [vmem:[#allocation8 + $0xa4] sm:$0xf]  ;;  %1048 = vmatmul.msk.bf16.vlgmr.msra.gmra.mxu0 %vm147_vm0, %v116_v19  ;;  %580 = vmatpush.bf16.msra.mxu2 %v1149_v29  ;;  %v1133_v42 = vor.u32 %v1460_v37, %v1132_v36  ;;  %v1134_v43 = vld [vmem:[#allocation8 + $0xb0] sm:$0xf0] }
  0x28   :  { %605 = vmatpush.bf16.msrb.mxu0 %v1169_v21  ;;  %v1490_v44 = vld [vmem:[#allocation8 + $0x1a4] sm:$0xf]  ;;  %v1262_v45 = vld [vmem:[#allocation8 + $0x1b0] sm:$0xf0]  ;;  %1049 = vmatmul.msk.bf16.vlgmr.msra.gmra.mxu1 %vm147_vm0, %v116_v19  ;;  %v1261_v46 = vor.u32 %v1492_v40, %v1260_v39  ;;  %v1116_v47 = vld [vmem:[#allocation8 + $0x80] sm:$0xf]  ;;  %v1137_v49 = vor.u32 %v1458_v41, %v1134_v43 }
  0x29   :  { %618 = vmatpush.bf16.msrb.mxu1 %v1297_v25  ;;  %593 = vmatpush.bf16.msra.mxu3 %v1277_v30  ;;  %v1456_v48 = vld [vmem:[#allocation8 + $0x8c] sm:$0xf0]  ;;  %v1244_v50 = vld [vmem:[#allocation8 + $0x180] sm:$0xf]  ;;  %v1265_v52 = vor.u32 %v1490_v44, %v1262_v45  ;;  %v1454_v53 = vld [vmem:[#allocation8 + $0x84] sm:$0xf] }
  0x2a   :  { %v1488_v51 = vld [vmem:[#allocation8 + $0x18c] sm:$0xf0]  ;;  %v1118_v54 = vld [vmem:[#allocation8 + $0x90] sm:$0xf0]  ;;  %v1117_v55 = vor.u32 %v1456_v48, %v1116_v47  ;;  %v1486_v56 = vld [vmem:[#allocation8 + $0x184] sm:$0xf] }
  0x2b   :  { %581 = vmatpush.bf16.msra.mxu2 %v1133_v42  ;;  %v1246_v57 = vld [vmem:[#allocation8 + $0x190] sm:$0xf0]  ;;  %v1245_v58 = vor.u32 %v1488_v51, %v1244_v50  ;;  %v1100_v59 = vld [vmem:[#allocation8 + $0x60] sm:$0xf]  ;;  %v1452_v60 = vld [vmem:[#allocation8 + $0x6c] sm:$0xf0]  ;;  %v1121_v61 = vor.u32 %v1454_v53, %v1118_v54 }
  0x2c   :  { %606 = vmatpush.bf16.msrb.mxu0 %v1153_v34  ;;  %v1228_v62 = vld [vmem:[#allocation8 + $0x160] sm:$0xf]  ;;  %v1484_v63 = vld [vmem:[#allocation8 + $0x16c] sm:$0xf0]  ;;  %v1249_v0 = vor.u32 %v1486_v56, %v1246_v57  ;;  %v1450_v1 = vld [vmem:[#allocation8 + $0x64] sm:$0xf]  ;;  %v1101_v3 = vor.u32 %v1452_v60, %v1100_v59 }
  0x2d   :  { %619 = vmatpush.bf16.msrb.mxu1 %v1281_v38  ;;  %594 = vmatpush.bf16.msra.mxu3 %v1261_v46  ;;  %v1102_v2 = vld [vmem:[#allocation8 + $0x70] sm:$0xf0]  ;;  %v1482_v4 = vld [vmem:[#allocation8 + $0x164] sm:$0xf]  ;;  %v1229_v6 = vor.u32 %v1484_v63, %v1228_v62  ;;  %v1084_v7 = vld [vmem:[#allocation8 + $0x40] sm:$0xf] }
  0x2e   :  { %v1230_v5 = vld [vmem:[#allocation8 + $0x170] sm:$0xf0]  ;;  %v1448_v8 = vld [vmem:[#allocation8 + $0x4c] sm:$0xf0]  ;;  %v1105_v9 = vor.u32 %v1450_v1, %v1102_v2  ;;  %v1212_v10 = vld [vmem:[#allocation8 + $0x140] sm:$0xf] }
  0x2f   :  { %582 = vmatpush.bf16.msra.mxu2 %v1117_v55  ;;  %v1480_v11 = vld [vmem:[#allocation8 + $0x14c] sm:$0xf0]  ;;  %v1233_v12 = vor.u32 %v1482_v4, %v1230_v5  ;;  %v1446_v13 = vld [vmem:[#allocation8 + $0x44] sm:$0xf]  ;;  %v1086_v14 = vld [vmem:[#allocation8 + $0x50] sm:$0xf0]  ;;  %v1085_v15 = vor.u32 %v1448_v8, %v1084_v7 }
  0x30   :  { %607 = vmatpush.bf16.msrb.mxu0 %v1137_v49  ;;  %v1478_v16 = vld [vmem:[#allocation8 + $0x144] sm:$0xf]  ;;  %v1214_v17 = vld [vmem:[#allocation8 + $0x150] sm:$0xf0]  ;;  %v1213_v18 = vor.u32 %v1480_v11, %v1212_v10  ;;  %v1068_v19 = vld [vmem:[#allocation8 + $0x20] sm:$0xf]  ;;  %v1089_v21 = vor.u32 %v1446_v13, %v1086_v14 }
  0x31   :  { %620 = vmatpush.bf16.msrb.mxu1 %v1265_v52  ;;  %595 = vmatpush.bf16.msra.mxu3 %v1245_v58  ;;  %v1444_v20 = vld [vmem:[#allocation8 + $0x2c] sm:$0xf0]  ;;  %v1196_v22 = vld [vmem:[#allocation8 + $0x120] sm:$0xf]  ;;  %v1442_v24 = vld [vmem:[#allocation8 + $0x24] sm:$0xf]  ;;  %v1217_v25 = vor.u32 %v1478_v16, %v1214_v17 }
  0x32   :  { %v1476_v23 = vld [vmem:[#allocation8 + $0x12c] sm:$0xf0]  ;;  %v1070_v26 = vld [vmem:[#allocation8 + $0x30] sm:$0xf0]  ;;  %v1474_v27 = vld [vmem:[#allocation8 + $0x124] sm:$0xf]  ;;  %v1069_v29 = vor.u32 %v1444_v20, %v1068_v19 }
  0x33   :  { %583 = vmatpush.bf16.msra.mxu2 %v1101_v3  ;;  %v1198_v28 = vld [vmem:[#allocation8 + $0x130] sm:$0xf0]  ;;  %v1052_v30 = vld [vmem:[#allocation8] sm:$0xf]  ;;  %v1440_v31 = vld [vmem:[#allocation8 + $0xc] sm:$0xf0]  ;;  %v1197_v33 = vor.u32 %v1476_v23, %v1196_v22  ;;  %v1073_v37 = vor.u32 %v1442_v24, %v1070_v26 }
  0x34   :  { %608 = vmatpush.bf16.msrb.mxu0 %v1121_v61  ;;  %v1180_v32 = vld [vmem:[#allocation8 + $0x100] sm:$0xf]  ;;  %v1472_v34 = vld [vmem:[#allocation8 + $0x10c] sm:$0xf0]  ;;  %v1438_v35 = vld [vmem:[#allocation8 + $0x4] sm:$0xf]  ;;  %v1201_v41 = vor.u32 %v1474_v27, %v1198_v28  ;;  %v1053_v45 = vor.u32 %v1440_v31, %v1052_v30 }
  0x35   :  { %621 = vmatpush.bf16.msrb.mxu1 %v1249_v0  ;;  %596 = vmatpush.bf16.msra.mxu3 %v1229_v6  ;;  %v1054_v36 = vld [vmem:[#allocation8 + $0x10] sm:$0xf0]  ;;  %v1470_v38 = vld [vmem:[#allocation8 + $0x104] sm:$0xf]  ;;  %v1172_v39 = vld [vmem:[#allocation8 + $0xe8] sm:$0xf]  ;;  %v1181_v48 = vor.u32 %v1472_v34, %v1180_v32 }
  0x36   :  { %v1469_v40 = vld [vmem:[#allocation8 + $0xf4] sm:$0xf0]  ;;  %v1182_v42 = vld [vmem:[#allocation8 + $0x110] sm:$0xf0]  ;;  %v1300_v43 = vld [vmem:[#allocation8 + $0x1e8] sm:$0xf]  ;;  %v1057_v52 = vor.u32 %v1438_v35, %v1054_v36 }
  0x37   :  { %584 = vmatpush.bf16.msra.mxu2 %v1085_v15  ;;  %v1501_v44 = vld [vmem:[#allocation8 + $0x1f4] sm:$0xf0]  ;;  %v1467_v46 = vld [vmem:[#allocation8 + $0xec] sm:$0xf]  ;;  %v1174_v47 = vld [vmem:[#allocation8 + $0xf8] sm:$0xf0]  ;;  %v1173_v49 = vor.u32 %v1469_v40, %v1172_v39  ;;  %v1185_v56 = vor.u32 %v1470_v38, %v1182_v42 }
  0x38   :  { %609 = vmatpush.bf16.msrb.mxu0 %v1105_v9  ;;  %v1499_v50 = vld [vmem:[#allocation8 + $0x1ec] sm:$0xf]  ;;  %v1302_v51 = vld [vmem:[#allocation8 + $0x1f8] sm:$0xf0]  ;;  %v1301_v53 = vor.u32 %v1501_v44, %v1300_v43  ;;  %v1156_v54 = vld [vmem:[#allocation8 + $0xc8] sm:$0xf]  ;;  %v1177_v57 = vor.u32 %v1467_v46, %v1174_v47 }
  0x39   :  { %622 = vmatpush.bf16.msrb.mxu1 %v1233_v12  ;;  %597 = vmatpush.bf16.msra.mxu3 %v1213_v18  ;;  %v1465_v55 = vld [vmem:[#allocation8 + $0xd4] sm:$0xf0]  ;;  %v1284_v58 = vld [vmem:[#allocation8 + $0x1c8] sm:$0xf]  ;;  %v1305_v60 = vor.u32 %v1499_v50, %v1302_v51  ;;  %v1463_v61 = vld [vmem:[#allocation8 + $0xcc] sm:$0xf] }
  0x3a   :  { %v1497_v59 = vld [vmem:[#allocation8 + $0x1d4] sm:$0xf0]  ;;  %v1158_v62 = vld [vmem:[#allocation8 + $0xd8] sm:$0xf0]  ;;  %v1157_v63 = vor.u32 %v1465_v55, %v1156_v54  ;;  %v1495_v0 = vld [vmem:[#allocation8 + $0x1cc] sm:$0xf] }
  0x3b   :  { %585 = vmatpush.bf16.msra.mxu2 %v1069_v29  ;;  %v1286_v1 = vld [vmem:[#allocation8 + $0x1d8] sm:$0xf0]  ;;  %v1285_v2 = vor.u32 %v1497_v59, %v1284_v58  ;;  %v1161_v3 = vor.u32 %v1463_v61, %v1158_v62  ;;  %v1140_v5 = vld [vmem:[#allocation8 + $0xa8] sm:$0xf]  ;;  %v1461_v6 = vld [vmem:[#allocation8 + $0xb4] sm:$0xf0] }
  0x3c   :  { %610 = vmatpush.bf16.msrb.mxu0 %v1089_v21  ;;  %v1289_v4 = vor.u32 %v1495_v0, %v1286_v1  ;;  %v1268_v7 = vld [vmem:[#allocation8 + $0x1a8] sm:$0xf]  ;;  %v1141_v8 = vor.u32 %v1461_v6, %v1140_v5  ;;  %v1493_v9 = vld [vmem:[#allocation8 + $0x1b4] sm:$0xf0]  ;;  %v1459_v10 = vld [vmem:[#allocation8 + $0xac] sm:$0xf] }
  0x3d   :  { %623 = vmatpush.bf16.msrb.mxu1 %v1217_v25  ;;  %598 = vmatpush.bf16.msra.mxu3 %v1197_v33  ;;  %v1269_v11 = vor.u32 %v1493_v9, %v1268_v7  ;;  %v1142_v12 = vld [vmem:[#allocation8 + $0xb8] sm:$0xf0]  ;;  %v1491_v13 = vld [vmem:[#allocation8 + $0x1ac] sm:$0xf]  ;;  %v1124_v17 = vld [vmem:[#allocation8 + $0x88] sm:$0xf] }
  0x3e   :  { %v1270_v14 = vld [vmem:[#allocation8 + $0x1b8] sm:$0xf0]  ;;  %v1145_v15 = vor.u32 %v1459_v10, %v1142_v12  ;;  %v1457_v18 = vld [vmem:[#allocation8 + $0x94] sm:$0xf0]  ;;  %v1252_v19 = vld [vmem:[#allocation8 + $0x188] sm:$0xf] }
  0x3f   :  { %586 = vmatpush.bf16.msra.mxu2 %v1053_v45  ;;  %v1273_v16 = vor.u32 %v1491_v13, %v1270_v14  ;;  %v1125_v20 = vor.u32 %v1457_v18, %v1124_v17  ;;  %v1489_v21 = vld [vmem:[#allocation8 + $0x194] sm:$0xf0]  ;;  %v1455_v22 = vld [vmem:[#allocation8 + $0x8c] sm:$0xf]  ;;  %v1126_v23 = vld [vmem:[#allocation8 + $0x98] sm:$0xf0] }
  0x40   :  { %611 = vmatpush.bf16.msrb.mxu0 %v1073_v37  ;;  %v1253_v24 = vor.u32 %v1489_v21, %v1252_v19  ;;  %v1129_v25 = vor.u32 %v1455_v22, %v1126_v23  ;;  %v1487_v26 = vld [vmem:[#allocation8 + $0x18c] sm:$0xf]  ;;  %v1254_v27 = vld [vmem:[#allocation8 + $0x198] sm:$0xf0]  ;;  %v1108_v29 = vld [vmem:[#allocation8 + $0x68] sm:$0xf] }
  0x41   :  { %624 = vmatpush.bf16.msrb.mxu1 %v1201_v41  ;;  %599 = vmatpush.bf16.msra.mxu3 %v1181_v48  ;;  %v1257_v28 = vor.u32 %v1487_v26, %v1254_v27  ;;  %v1453_v30 = vld [vmem:[#allocation8 + $0x74] sm:$0xf0]  ;;  %v1236_v31 = vld [vmem:[#allocation8 + $0x168] sm:$0xf]  ;;  %v1451_v34 = vld [vmem:[#allocation8 + $0x6c] sm:$0xf] }
  0x42   :  { %v1109_v32 = vor.u32 %v1453_v30, %v1108_v29  ;;  %v1485_v33 = vld [vmem:[#allocation8 + $0x174] sm:$0xf0]  ;;  %v1110_v35 = vld [vmem:[#allocation8 + $0x78] sm:$0xf0]  ;;  %v1483_v38 = vld [vmem:[#allocation8 + $0x16c] sm:$0xf] }
  0x43   :  { %631 = vmatpush.bf16.msrb.mxu2 %v1173_v49  ;;  %v1237_v36 = vor.u32 %v1485_v33, %v1236_v31  ;;  %v1113_v37 = vor.u32 %v1451_v34, %v1110_v35  ;;  %v1238_v39 = vld [vmem:[#allocation8 + $0x178] sm:$0xf0]  ;;  %v1092_v40 = vld [vmem:[#allocation8 + $0x48] sm:$0xf]  ;;  %v1449_v42 = vld [vmem:[#allocation8 + $0x54] sm:$0xf0] }
  0x44   :  { %612 = vmatpush.bf16.msrb.mxu0 %v1057_v52  ;;  %v1241_v41 = vor.u32 %v1483_v38, %v1238_v39  ;;  %v1220_v43 = vld [vmem:[#allocation8 + $0x148] sm:$0xf]  ;;  %v1481_v44 = vld [vmem:[#allocation8 + $0x154] sm:$0xf0]  ;;  %v1093_v45 = vor.u32 %v1449_v42, %v1092_v40  ;;  %v1447_v47 = vld [vmem:[#allocation8 + $0x4c] sm:$0xf] }
  0x45   :  { %644 = vmatpush.bf16.msrb.mxu3 %v1301_v53  ;;  %625 = vmatpush.bf16.msrb.mxu1 %v1185_v56  ;;  %v1221_v46 = vor.u32 %v1481_v44, %v1220_v43  ;;  %v1094_v48 = vld [vmem:[#allocation8 + $0x58] sm:$0xf0]  ;;  %v1479_v49 = vld [vmem:[#allocation8 + $0x14c] sm:$0xf]  ;;  %v1076_v52 = vld [vmem:[#allocation8 + $0x28] sm:$0xf] }
  0x46   :  { %v1097_v50 = vor.u32 %v1447_v47, %v1094_v48  ;;  %v1222_v51 = vld [vmem:[#allocation8 + $0x158] sm:$0xf0]  ;;  %v1445_v53 = vld [vmem:[#allocation8 + $0x34] sm:$0xf0]  ;;  %v1204_v55 = vld [vmem:[#allocation8 + $0x128] sm:$0xf] }
  0x47   :  { %632 = vmatpush.bf16.msrb.mxu2 %v1157_v63  ;;  %v1225_v54 = vor.u32 %v1479_v49, %v1222_v51  ;;  %v1477_v56 = vld [vmem:[#allocation8 + $0x134] sm:$0xf0]  ;;  %v1077_v58 = vor.u32 %v1445_v53, %v1076_v52  ;;  %v1078_v59 = vld [vmem:[#allocation8 + $0x38] sm:$0xf0]  ;;  %v1060_v63 = vld [vmem:[#allocation8 + $0x8] sm:$0xf] }
  0x48   :  { %657 = vmatpush.bf16.msra.mxu0 %v1177_v57  ;;  %v1443_v57 = vld [vmem:[#allocation8 + $0x2c] sm:$0xf]  ;;  %v1206_v61 = vld [vmem:[#allocation8 + $0x138] sm:$0xf0]  ;;  %v1205_v62 = vor.u32 %v1477_v56, %v1204_v55  ;;  %v1441_v0 = vld [vmem:[#allocation8 + $0x14] sm:$0xf0] }
  0x49   :  { %670 = vmatpush.bf16.msra.mxu1 %v1305_v60  ;;  %645 = vmatpush.bf16.msrb.mxu3 %v1285_v2  ;;  %v1475_v60 = vld [vmem:[#allocation8 + $0x12c] sm:$0xf]  ;;  %v1081_v1 = vor.u32 %v1443_v57, %v1078_v59  ;;  %v1062_v6 = vld [vmem:[#allocation8 + $0x18] sm:$0xf0]  ;;  %v1061_v9 = vor.u32 %v1441_v0, %v1060_v63  ;;  %v1516_v31 = vld [vmem:[#allocation11 + $0x70] sm:$0xff]  ;;  %s1017_s11 = sshll.u32 %s1738_s10, 4  ;;  %s1018_s11 = int_to_ptr.vmem [resolvable:$true] %s1017_s11 }
  0x4a   :  { %v1209_v2 = vor.u32 %v1475_v60, %v1206_v61  ;;  %v1439_v5 = vld [vmem:[#allocation8 + $0xc] sm:$0xf]  ;;  %v121_v13 = vld [vmem:[#allocation7] sm:$0x3]  ;;  %v1532_v33 = vld [vmem:[#allocation11 + $0xf0] sm:$0xff]  ;;  %s1019_s14 = sshll.u32 %s1812_s7, 4  ;;  %s1020_s14 = int_to_ptr.hbm [resolvable:$true] %s1019_s14 }
  0x4b   :  { %633 = vmatpush.bf16.msrb.mxu2 %v1141_v8  ;;  %v1471_v7 = vld [vmem:[#allocation8 + $0x10c] sm:$0xf]  ;;  %v1190_v8 = vld [vmem:[#allocation8 + $0x118] sm:$0xf0]  ;;  %v123_v14 = vperm.slane %v121_v13, 0  ;;  %v1512_v39 = vld [vmem:[#allocation11 + $0x50] sm:$0xff] }
  0x4c   :  { %658 = vmatpush.bf16.msra.mxu0 %v1161_v3  ;;  %v1188_v3 = vld [vmem:[#allocation8 + $0x108] sm:$0xf]  ;;  %v1193_v12 = vor.u32 %v1471_v7, %v1190_v8  ;;  %v1509_v26 = vld [vmem:[#allocation11 + $0x38] sm:$0xff]  ;;  %v1515_v34 = vld [vmem:[#allocation11 + $0x68] sm:$0xff] }
  0x4d   :  { %671 = vmatpush.bf16.msra.mxu1 %v1289_v4  ;;  %646 = vmatpush.bf16.msrb.mxu3 %v1269_v11  ;;  %v1473_v4 = vld [vmem:[#allocation8 + $0x114] sm:$0xf0]  ;;  %v1065_v11 = vor.u32 %v1439_v5, %v1062_v6  ;;  %v1507_v35 = vld [vmem:[#allocation11 + $0x28] sm:$0xff]  ;;  %v1513_v38 = vld [vmem:[#allocation11 + $0x58] sm:$0xff] }
  0x4e   :  { %v1189_v10 = vor.u32 %v1473_v4, %v1188_v3  ;;  %v1505_v40 = vld [vmem:[#allocation11 + $0x18] sm:$0xff]  ;;  %v1511_v42 = vld [vmem:[#allocation11 + $0x48] sm:$0xff]  ;;  %v1504_v44 = vld [vmem:[#allocation11 + $0x10] sm:$0xff] }
  0x4f   :  { %634 = vmatpush.bf16.msrb.mxu2 %v1125_v20  ;;  %v1531_v43 = vld [vmem:[#allocation11 + $0xe8] sm:$0xff]  ;;  %v1530_v47 = vld [vmem:[#allocation11 + $0xe0] sm:$0xff]  ;;  %v1528_v53 = vld [vmem:[#allocation11 + $0xd0] sm:$0xff] }
  0x50   :  { %659 = vmatpush.bf16.msra.mxu0 %v1145_v15  ;;  %v124_v15 = vperm.slane %v121_v13, 1  ;;  %v1503_v48 = vld [vmem:[#allocation11 + $0x8] sm:$0xff]  ;;  %v1502_v51 = vld [vmem:[#allocation11] sm:$0xff]  ;;  %v1520_v56 = vld [vmem:[#allocation11 + $0x90] sm:$0xff] }
  0x51   :  { %672 = vmatpush.bf16.msra.mxu1 %v1273_v16  ;;  %647 = vmatpush.bf16.msrb.mxu3 %v1253_v24  ;;  %v1523_v49 = vld [vmem:[#allocation11 + $0xa8] sm:$0xff]  ;;  %v1522_v52 = vld [vmem:[#allocation11 + $0xa0] sm:$0xff]  ;;  %v249_v59 = vld [vmem:[#allocation10] sm:$0xf] }
  0x52   :  { %v1527_v55 = vld [vmem:[#allocation11 + $0xc8] sm:$0xff]  ;;  %v1526_v57 = vld [vmem:[#allocation11 + $0xc0] sm:$0xff]  ;;  %v252_v61 = vperm.slane %v249_v59, 1 }
  0x53   :  { %635 = vmatpush.bf16.msrb.mxu2 %v1109_v32  ;;  %v1508_v32 = vld [vmem:[#allocation11 + $0x30] sm:$0xff]  ;;  %v1518_v60 = vld [vmem:[#allocation11 + $0x80] sm:$0xff] }
  0x54   :  { %660 = vmatpush.bf16.msra.mxu0 %v1129_v25  ;;  %v1517_v25 = vld [vmem:[#allocation11 + $0x78] sm:$0xff] }
  0x55   :  { %673 = vmatpush.bf16.msra.mxu1 %v1257_v28  ;;  %648 = vmatpush.bf16.msrb.mxu3 %v1237_v36  ;;  %v1533_v28 = vld [vmem:[#allocation11 + $0xf8] sm:$0xff]  ;;  %v1514_v36 = vld [vmem:[#allocation11 + $0x60] sm:$0xff] }
  0x57   :  { %636 = vmatpush.bf16.msrb.mxu2 %v1093_v45  ;;  %v1524_v45 = vld [vmem:[#allocation11 + $0xb0] sm:$0xff] }
  0x58   :  { %661 = vmatpush.bf16.msra.mxu0 %v1113_v37  ;;  %v1506_v37 = vld [vmem:[#allocation11 + $0x20] sm:$0xff] }
  0x59   :  { %674 = vmatpush.bf16.msra.mxu1 %v1241_v41  ;;  %649 = vmatpush.bf16.msrb.mxu3 %v1221_v46  ;;  %v1525_v41 = vld [vmem:[#allocation11 + $0xb8] sm:$0xff]  ;;  %v1510_v46 = vld [vmem:[#allocation11 + $0x40] sm:$0xff] }
  0x5b   :  { %637 = vmatpush.bf16.msrb.mxu2 %v1077_v58  ;;  %v1519_v58 = vld [vmem:[#allocation11 + $0x88] sm:$0xff] }
  0x5c   :  { %662 = vmatpush.bf16.msra.mxu0 %v1097_v50  ;;  %v1529_v50 = vld [vmem:[#allocation11 + $0xd8] sm:$0xff] }
  0x5d   :  { %675 = vmatpush.bf16.msra.mxu1 %v1225_v54  ;;  %650 = vmatpush.bf16.msrb.mxu3 %v1205_v62  ;;  %v1521_v54 = vld [vmem:[#allocation11 + $0x98] sm:$0xff] }
  0x5f   :  { %638 = vmatpush.bf16.msrb.mxu2 %v1061_v9 }
  0x60   :  { %663 = vmatpush.bf16.msra.mxu0 %v1081_v1 }
  0x61   :  { %676 = vmatpush.bf16.msra.mxu1 %v1209_v2  ;;  %651 = vmatpush.bf16.msrb.mxu3 %v1189_v10  ;;  %v251_v2 = vperm.slane %v249_v59, 0 }
  0x64   :  { %664 = vmatpush.bf16.msra.mxu0 %v1065_v11 }
  0x65   :  { %677 = vmatpush.bf16.msra.mxu1 %v1193_v12 }
  0xa4   :  { %v160_v16 = vpop.f32.mrf.mxu0 }
  0xa5   :  { %v161_v17 = vadd.f32 %v160_v16, %v123_v14  ;;  %v173_v18 = vpop.f32.mrf.mxu1  ;;  %v254_v14 = vperm.slane %v249_v59, 3 }
  0xa6   :  { %v174_v19 = vadd.f32 %v173_v18, %v124_v15 }
  0xa7   :  { %vm177_vm1 = vcmp.gt.f32.partialorder %v161_v17, 0.0  ;;  %v179_v20 = vmul.f32 0.2, %v161_v17 }
  0xa8   :  { %vm178_vm2 = vcmp.gt.f32.partialorder %v174_v19, 0.0  ;;  %v180_v21 = vmul.f32 0.2, %v174_v19 }
  0xa9   :  { %v181_v22 = vsel %vm177_vm1, %v161_v17, %v179_v20 }
  0xaa   :  { %v183_v23 = vpack.c.bf16 %v181_v22, %v181_v22  ;;  %v182_v24 = vsel %vm178_vm2, %v174_v19, %v180_v21  ;;  %v253_v22 = vperm.slane %v249_v59, 2 }
  0xab   :  { %v184_v27 = vpack.c.bf16 %v182_v24, %v182_v24 }
  0xac   :  { %v162_v29 = vpop.f32.mrf.mxu0  ;;  %587 = vmatmul.bf16.vlgmr.msra.gmra.mxu2 %v183_v23  ;;  %613 = vmatmul.bf16.vlgmr.msrb.gmra.mxu0 %v183_v23 }
  0xad   :  { %v175_v30 = vpop.f32.mrf.mxu1  ;;  %600 = vmatmul.bf16.vlgmr.msra.gmra.mxu3 %v184_v27  ;;  %626 = vmatmul.bf16.vlgmr.msrb.gmra.mxu1 %v184_v27 }
  0xae   :  { %972 = vmatpush.bf16.msra.mxu3 %v1517_v25  ;;  %959 = vmatpush.bf16.msra.mxu2 %v1509_v26 }
  0xaf   :  { %998 = vmatpush.bf16.msrb.mxu1 %v1533_v28  ;;  %985 = vmatpush.bf16.msrb.mxu0 %v1525_v41 }
  0xb2   :  { %973 = vmatpush.bf16.msra.mxu3 %v1516_v31  ;;  %960 = vmatpush.bf16.msra.mxu2 %v1508_v32 }
  0xb3   :  { %999 = vmatpush.bf16.msrb.mxu1 %v1532_v33  ;;  %986 = vmatpush.bf16.msrb.mxu0 %v1524_v45 }
  0xb6   :  { %974 = vmatpush.bf16.msra.mxu3 %v1515_v34  ;;  %961 = vmatpush.bf16.msra.mxu2 %v1507_v35 }
  0xb7   :  { %1000 = vmatpush.bf16.msrb.mxu1 %v1531_v43  ;;  %987 = vmatpush.bf16.msrb.mxu0 %v1523_v49 }
  0xba   :  { %975 = vmatpush.bf16.msra.mxu3 %v1514_v36  ;;  %962 = vmatpush.bf16.msra.mxu2 %v1506_v37 }
  0xbb   :  { %1001 = vmatpush.bf16.msrb.mxu1 %v1530_v47  ;;  %988 = vmatpush.bf16.msrb.mxu0 %v1522_v52 }
  0xbc   :  { %639 = vmatmul.bf16.vlgmr.msrb.gmra.mxu2 %v183_v23  ;;  %665 = vmatmul.bf16.vlgmr.msra.gmra.mxu0 %v183_v23 }
  0xbd   :  { %652 = vmatmul.bf16.vlgmr.msrb.gmra.mxu3 %v184_v27  ;;  %678 = vmatmul.bf16.vlgmr.msra.gmra.mxu1 %v184_v27 }
  0xbe   :  { %976 = vmatpush.bf16.msra.mxu3 %v1513_v38  ;;  %963 = vmatpush.bf16.msra.mxu2 %v1505_v40 }
  0xbf   :  { %1002 = vmatpush.bf16.msrb.mxu1 %v1529_v50  ;;  %989 = vmatpush.bf16.msrb.mxu0 %v1521_v54 }
  0xc2   :  { %977 = vmatpush.bf16.msra.mxu3 %v1512_v39  ;;  %964 = vmatpush.bf16.msra.mxu2 %v1504_v44  ;;  %v1547_v39 = vld [vmem:[%s1811_s6] ss:$0 sm:$0xff] }
  0xc3   :  { %1003 = vmatpush.bf16.msrb.mxu1 %v1528_v53  ;;  %990 = vmatpush.bf16.msrb.mxu0 %v1520_v56 }
  0xc6   :  { %978 = vmatpush.bf16.msra.mxu3 %v1511_v42  ;;  %965 = vmatpush.bf16.msra.mxu2 %v1503_v48 }
  0xc7   :  { %1004 = vmatpush.bf16.msrb.mxu1 %v1527_v55  ;;  %991 = vmatpush.bf16.msrb.mxu0 %v1519_v58 }
  0xca   :  { %979 = vmatpush.bf16.msra.mxu3 %v1510_v46  ;;  %966 = vmatpush.bf16.msra.mxu2 %v1502_v51 }
  0xcb   :  { %1005 = vmatpush.bf16.msrb.mxu1 %v1526_v57  ;;  %992 = vmatpush.bf16.msrb.mxu0 %v1518_v60 }
 0x129   :  { %v614_v62 = vpop.f32.mrf.mxu0 }
 0x12a   :  { %v615_v63 = vadd.f32 %v614_v62, %v252_v61  ;;  %v627_v0 = vpop.f32.mrf.mxu1 }
 0x12c   :  { %v628_v1 = vadd.f32 %v627_v0, %v615_v63 }
 0x12e   :  { %vm684_vm3 = vcmp.gt.f32.partialorder %v628_v1, 0.0  ;;  %v688_v3 = vmul.f32 0.2, %v628_v1 }
 0x12f   :  { %v588_v4 = vpop.f32.mrf.mxu2 }
 0x130   :  { %v692_v5 = vsel %vm684_vm3, %v628_v1, %v688_v3  ;;  %v589_v6 = vadd.f32 %v588_v4, %v251_v2  ;;  %v601_v7 = vpop.f32.mrf.mxu3 }
 0x131   :  { %v696_v8 = vpack.c.bf16 %v692_v5, %v692_v5  ;;  %v616_v9 = vpop.f32.mrf.mxu0 }
 0x132   :  { %v602_v10 = vadd.f32 %v601_v7, %v589_v6  ;;  %v629_v11 = vpop.f32.mrf.mxu1 }
 0x133   :  { %980 = vmatmul.bf16.vlgmr.msra.gmra.mxu3 %v696_v8 }
 0x134   :  { %vm683_vm4 = vcmp.gt.f32.partialorder %v602_v10, 0.0  ;;  %v687_v12 = vmul.f32 0.2, %v602_v10 }
 0x136   :  { %v691_v13 = vsel %vm683_vm4, %v602_v10, %v687_v12 }
 0x137   :  { %v695_v15 = vpack.c.bf16 %v691_v13, %v691_v13  ;;  %v590_v16 = vpop.f32.mrf.mxu2 }
 0x138   :  { %v603_v17 = vpop.f32.mrf.mxu3 }
 0x139   :  { %v666_v18 = vpop.f32.mrf.mxu0  ;;  %967 = vmatmul.bf16.vlgmr.msra.gmra.mxu2 %v695_v15 }
 0x13a   :  { %v667_v19 = vadd.f32 %v666_v18, %v254_v14  ;;  %v679_v20 = vpop.f32.mrf.mxu1 }
 0x13c   :  { %v680_v21 = vadd.f32 %v679_v20, %v667_v19 }
 0x13e   :  { %vm686_vm5 = vcmp.gt.f32.partialorder %v680_v21, 0.0  ;;  %v690_v23 = vmul.f32 0.2, %v680_v21 }
 0x13f   :  { %v640_v24 = vpop.f32.mrf.mxu2 }
 0x140   :  { %v694_v25 = vsel %vm686_vm5, %v680_v21, %v690_v23  ;;  %v641_v26 = vadd.f32 %v640_v24, %v253_v22  ;;  %v653_v27 = vpop.f32.mrf.mxu3 }
 0x141   :  { %v698_v28 = vpack.c.bf16 %v694_v25, %v694_v25  ;;  %v668_v29 = vpop.f32.mrf.mxu0 }
 0x142   :  { %v654_v30 = vadd.f32 %v653_v27, %v641_v26  ;;  %v681_v31 = vpop.f32.mrf.mxu1 }
 0x143   :  { %1006 = vmatmul.bf16.vlgmr.msrb.gmra.mxu1 %v698_v28 }
 0x144   :  { %vm685_vm6 = vcmp.gt.f32.partialorder %v654_v30, 0.0  ;;  %v689_v32 = vmul.f32 0.2, %v654_v30 }
 0x146   :  { %v693_v33 = vsel %vm685_vm6, %v654_v30, %v689_v32 }
 0x147   :  { %v697_v34 = vpack.c.bf16 %v693_v33, %v693_v33  ;;  %v642_v35 = vpop.f32.mrf.mxu2 }
 0x148   :  { %v655_v36 = vpop.f32.mrf.mxu3 }
 0x149   :  { %993 = vmatmul.bf16.vlgmr.msrb.gmra.mxu0 %v697_v34 }
 0x1b6   :  { %v981_v37 = vpop.f32.mrf.mxu3 }
 0x1bc   :  { %v968_v38 = vpop.f32.mrf.mxu2 }
 0x1bd   :  { %v969_v42 = vadd.f32 %v1547_v39, %v968_v38 }
 0x1be   :  { %v983_v40 = vpop.f32.mrf.mxu3 }
 0x1bf   :  { %v982_v44 = vadd.f32 %v981_v37, %v969_v42 }
 0x1c0   :  { %v1007_v41 = vpop.f32.mrf.mxu1 }
 0x1c4   :  { %v970_v43 = vpop.f32.mrf.mxu2 }
 0x1c6   :  { %v994_v45 = vpop.f32.mrf.mxu0 }
 0x1c7   :  { %v995_v46 = vadd.f32 %v994_v45, %v982_v44 }
 0x1c8   :  { %v1009_v47 = vpop.f32.mrf.mxu1 }
 0x1c9   :  { %v1008_v48 = vadd.f32 %v1007_v41, %v995_v46 }
 0x1cb   :  { %1011 = vst [vmem:[#allocation13] sm:$0xff] %v1008_v48 }
 0x1cc   :  { %1022 = dma.vmem_to_hbm [thread:$0]  %s1018_s11, 128, %s1020_s14, [#allocation4]  }
 0x1ce   :  { %v996_v49 = vpop.f32.mrf.mxu0 }
 0x1cf   :  { %1724 = dma.done.wait [#allocation4], 128  }
 0x1d0   :  { %1725 = vsyncadd [#allocation4], 4294967168 }
 0x1d1   :  { %1027 = vsyncpa [#allocation3], 1 }
 0x1d2   :  { %1028 = vsyncpa [#allocation6], 1 }
 0x1d3   :  { %1029 = vsyncpa [#allocation9], 1 }
 0x1d4   :  { %1030 = vsyncpa [#allocation12], 1 }
 0x1d5   :  { %1031 = vsyncpa [#allocation4], 1 }

</bundles_post_ra>
